<compile_context>
chip_gen: v7x
topology: tpu7x:2x2x1
jax: 0.10.0
libtpu: 0.0.40
codegen_flags: <defaults>
</compile_context>

<pallas_src>
import jax
import jax.numpy as jnp
from jax.experimental import pallas as pl
from jax.experimental.pallas import tpu as pltpu


def critic_kernel(state_ref, action_ref, w1_ref, b1_ref, w2_ref, b2_ref,
                  w3_ref, b3_ref, o_ref):
    """Fused MLP block: relu(relu([s|a] @ W1 + b1) @ W2 + b2) @ W3 + b3."""
    state = state_ref[...]          # (TB, Ds)
    action = action_ref[...]        # (TB, Da)
    w1 = w1_ref[...]                # (Ds + Da, H)
    ds = state.shape[1]
    da = action.shape[1]
    tb = state.shape[0]
    hidden = w1.shape[1]

    # ---- Layer 1: fused concat + tiny-K "matmul" done as VPU FMAs ----------
    # K = Ds + Da is tiny (3 for MountainCarContinuous); an MXU pass would be
    # ~1% utilized and pays push/pop latency.  A handful of broadcast
    # multiply-adds on the VPU finishes in a few bundles and keeps the MXU
    # free for layer 2.
    h1 = jnp.broadcast_to(b1_ref[...], (tb, hidden))
    for k in range(ds):                                   # static unroll
        h1 = h1 + state[:, k:k + 1] * w1[k:k + 1, :]
    for k in range(da):                                   # static unroll
        h1 = h1 + action[:, k:k + 1] * w1[ds + k:ds + k + 1, :]
    h1 = jnp.maximum(h1, 0.0)

    # ---- Layer 2: (TB, H) @ (H, H) -> real matmul, MXU ----------------------
    h2 = jnp.dot(h1, w2_ref[...], preferred_element_type=jnp.float32) + b2_ref[...]
    h2 = jnp.maximum(h2, 0.0)

    # ---- Layer 3: (TB, H) @ (H, out) ----------------------------------------
    out = jnp.dot(h2, w3_ref[...], preferred_element_type=jnp.float32) + b3_ref[...]
    o_ref[...] = out.astype(o_ref.dtype)


def pad_params_for_tpu(params, lane=128):
    """Zero-pad the hidden dimension up to a multiple of the 128-lane vreg width.

    Mathematically inert: padded hidden lanes stay exactly 0 through the bias
    add / ReLU (zero bias, zero weight columns) and contribute 0 to the next
    layer (zero weight rows).  Done once, outside the hot path.
    """
    w1, b1, w2, b2, w3, b3 = params
    h = w1.shape[1]
    hp = ((h + lane - 1) // lane) * lane
    if hp == h:
        return params
    p = hp - h
    w1 = jnp.pad(w1, ((0, 0), (0, p)))
    b1 = jnp.pad(b1, ((0, 0), (0, p)))
    w2 = jnp.pad(w2, ((0, p), (0, p)))
    b2 = jnp.pad(b2, ((0, 0), (0, p)))
    w3 = jnp.pad(w3, ((0, p), (0, 0)))
    return (w1, b1, w2, b2, w3, b3)


def critic_forward(state, action, params, *, block_batch=256):
    """Concat-free fused MLP forward.  state: (B, Ds), action: (B, Da)."""
    w1, b1, w2, b2, w3, b3 = params
    batch = state.shape[0]
    ds = state.shape[1]
    da = action.shape[1]
    hidden = w1.shape[1]
    out_size = w3.shape[1]

    # Pad batch to a multiple of 8 (sublanes), then pick the batch tile.
    bp = ((batch + 7) // 8) * 8
    tb = min(block_batch, bp)
    bp = ((bp + tb - 1) // tb) * tb
    if bp != batch:
        pad = bp - batch
        state = jnp.pad(state, ((0, pad), (0, 0)))
        action = jnp.pad(action, ((0, pad), (0, 0)))

    grid = (bp // tb,)

    # Grid-invariant (resident) blocks for all weights/biases: they are DMA'd
    # once and stay in VMEM across grid steps; only activations stream.
    def resident(a):
        return pl.BlockSpec(a.shape, lambda i: (0,) * a.ndim)

    flops = 2 * bp * ((ds + da) * hidden + hidden * hidden + hidden * out_size)
    bytes_accessed = 4 * (bp * (ds + da + out_size)
                          + w1.size + b1.size + w2.size + b2.size
                          + w3.size + b3.size)

    # TODO(synk): for very large training batches with output_size == 1, a
    # lane-dense (1, B)-shaped output slab would avoid masked vst; kept as
    # (B, out) here to preserve the module's output layout.
    out = pl.pallas_call(
        critic_kernel,
        out_shape=jax.ShapeDtypeStruct((bp, out_size), jnp.float32),
        grid=grid,
        in_specs=[
            pl.BlockSpec((tb, ds), lambda i: (i, 0)),
            pl.BlockSpec((tb, da), lambda i: (i, 0)),
            resident(w1), resident(b1),
            resident(w2), resident(b2),
            resident(w3), resident(b3),
        ],
        out_specs=pl.BlockSpec((tb, out_size), lambda i: (i, 0)),
        compiler_params=pltpu.CompilerParams(
            dimension_semantics=("parallel",)),   # v7x: split batch across TCs
        cost_estimate=pl.CostEstimate(
            flops=flops, transcendentals=0, bytes_accessed=bytes_accessed),
    )(state, action, w1, b1, w2, b2, w3, b3)

    return out[:batch]


def init_critic_params(key, input_size, hidden_size, output_size):
    """Deterministic init mimicking nn.Linear (uniform ±1/sqrt(fan_in))."""
    ks = jax.random.split(key, 6)

    def linear(kw, kb, fan_in, fan_out):
        bound = 1.0 / jnp.sqrt(jnp.float32(fan_in))
        w = jax.random.uniform(kw, (fan_in, fan_out), jnp.float32, -bound, bound)
        b = jax.random.uniform(kb, (1, fan_out), jnp.float32, -bound, bound)
        return w, b

    w1, b1 = linear(ks[0], ks[1], input_size, hidden_size)
    w2, b2 = linear(ks[2], ks[3], hidden_size, hidden_size)
    w3, b3 = linear(ks[4], ks[5], hidden_size, output_size)
    return (w1, b1, w2, b2, w3, b3)


def critic_reference(state, action, params):
    """Pure-JAX reference (mirrors the PyTorch module) for correctness check."""
    w1, b1, w2, b2, w3, b3 = params
    x = jnp.concatenate([state, action], axis=1)
    x = jnp.maximum(x @ w1 + b1, 0.0)
    x = jnp.maximum(x @ w2 + b2, 0.0)
    return x @ w3 + b3


if __name__ == "__main__":
    # MountainCarContinuous: state dim = 2, action dim = 1  -> input_size = 3
    batch = 8
    state_dim, action_dim = 2, 1
    input_size = state_dim + action_dim
    hidden_size = 32
    output_size = 1

    key = jax.random.PRNGKey(0)
    k_state, k_action, k_params = jax.random.split(key, 3)

    state = jax.random.normal(k_state, (batch, state_dim), jnp.float32)
    action = jax.random.normal(k_action, (batch, action_dim), jnp.float32)
    params = init_critic_params(k_params, input_size, hidden_size, output_size)

    # One-time, math-inert padding of the hidden dim to the 128-lane width.
    padded_params = pad_params_for_tpu(params)

    fwd = jax.jit(lambda s, a: critic_forward(s, a, padded_params))
    out = jax.block_until_ready(fwd(state, action))

    ref = critic_reference(state, action, params)
    assert out.shape == (batch, output_size)
    assert jnp.allclose(out, ref, atol=1e-5, rtol=1e-5), "mismatch vs reference"

    print("KERNEL_OK")
</pallas_src>

<mosaic_0001>
module attributes {stable_mosaic.version = 11 : i64} {
  func.func @critic_kernel(%arg0: i32, %arg1: memref<8x2xf32, #tpu.memory_space<vmem>>, %arg2: memref<8x1xf32, #tpu.memory_space<vmem>>, %arg3: memref<3x128xf32, #tpu.memory_space<vmem>>, %arg4: memref<1x128xf32, #tpu.memory_space<vmem>>, %arg5: memref<128x128xf32, #tpu.memory_space<vmem>>, %arg6: memref<1x128xf32, #tpu.memory_space<vmem>>, %arg7: memref<128x1xf32, #tpu.memory_space<vmem>>, %arg8: memref<1x1xf32, #tpu.memory_space<vmem>>, %arg9: memref<8x1xf32, #tpu.memory_space<vmem>>) attributes {dimension_semantics = [#tpu.dimension_semantics<parallel>], iteration_bounds = array<i64: 1>, scalar_prefetch = 0 : i64, scratch_operands = 0 : i64, tpu.core_type = #tpu.core_type<tc>, window_params = [{transform_indices = @transform_0, window_bounds = array<i64: 8, 2>}, {transform_indices = @transform_1, window_bounds = array<i64: 8, 1>}, {pipeline_mode = #tpu.pipeline_mode<synchronous>, transform_indices = @transform_2, window_bounds = array<i64: 3, 128>}, {pipeline_mode = #tpu.pipeline_mode<synchronous>, transform_indices = @transform_3, window_bounds = array<i64: 1, 128>}, {pipeline_mode = #tpu.pipeline_mode<synchronous>, transform_indices = @transform_4, window_bounds = array<i64: 128, 128>}, {pipeline_mode = #tpu.pipeline_mode<synchronous>, transform_indices = @transform_5, window_bounds = array<i64: 1, 128>}, {pipeline_mode = #tpu.pipeline_mode<synchronous>, transform_indices = @transform_6, window_bounds = array<i64: 128, 1>}, {pipeline_mode = #tpu.pipeline_mode<synchronous>, transform_indices = @transform_7, window_bounds = array<i64: 1, 1>}, {transform_indices = @transform_8, window_bounds = array<i64: 8, 1>}]} {
    %c0 = arith.constant 0 : index
    %c0_0 = arith.constant 0 : index
    %0 = vector.load %arg1[%c0, %c0_0] : memref<8x2xf32, #tpu.memory_space<vmem>>, vector<8x2xf32>
    %c0_1 = arith.constant 0 : index
    %c0_2 = arith.constant 0 : index
    %1 = vector.load %arg2[%c0_1, %c0_2] : memref<8x1xf32, #tpu.memory_space<vmem>>, vector<8x1xf32>
    %c0_3 = arith.constant 0 : index
    %c0_4 = arith.constant 0 : index
    %2 = vector.load %arg3[%c0_3, %c0_4] : memref<3x128xf32, #tpu.memory_space<vmem>>, vector<3x128xf32>
    %c0_5 = arith.constant 0 : index
    %c0_6 = arith.constant 0 : index
    %3 = vector.load %arg4[%c0_5, %c0_6] : memref<1x128xf32, #tpu.memory_space<vmem>>, vector<1x128xf32>
    %4 = vector.shape_cast %3 : vector<1x128xf32> to vector<1x128xf32>
    %5 = vector.broadcast %4 : vector<1x128xf32> to vector<8x128xf32>
    %6 = vector.extract_strided_slice %0 {offsets = [0, 0], sizes = [8, 1], strides = [1, 1]} : vector<8x2xf32> to vector<8x1xf32>
    %7 = vector.extract_strided_slice %2 {offsets = [0, 0], sizes = [1, 128], strides = [1, 1]} : vector<3x128xf32> to vector<1x128xf32>
    %8 = vector.broadcast %6 : vector<8x1xf32> to vector<8x128xf32>
    %9 = vector.broadcast %7 : vector<1x128xf32> to vector<8x128xf32>
    %10 = arith.mulf %8, %9 : vector<8x128xf32>
    %11 = arith.addf %5, %10 : vector<8x128xf32>
    %12 = vector.extract_strided_slice %0 {offsets = [0, 1], sizes = [8, 1], strides = [1, 1]} : vector<8x2xf32> to vector<8x1xf32>
    %13 = vector.extract_strided_slice %2 {offsets = [1, 0], sizes = [1, 128], strides = [1, 1]} : vector<3x128xf32> to vector<1x128xf32>
    %14 = vector.broadcast %12 : vector<8x1xf32> to vector<8x128xf32>
    %15 = vector.broadcast %13 : vector<1x128xf32> to vector<8x128xf32>
    %16 = arith.mulf %14, %15 : vector<8x128xf32>
    %17 = arith.addf %11, %16 : vector<8x128xf32>
    %18 = vector.extract_strided_slice %2 {offsets = [2, 0], sizes = [1, 128], strides = [1, 1]} : vector<3x128xf32> to vector<1x128xf32>
    %19 = vector.broadcast %1 : vector<8x1xf32> to vector<8x128xf32>
    %20 = vector.broadcast %18 : vector<1x128xf32> to vector<8x128xf32>
    %21 = arith.mulf %19, %20 : vector<8x128xf32>
    %22 = arith.addf %17, %21 : vector<8x128xf32>
    %cst = arith.constant 0.000000e+00 : f32
    %23 = vector.broadcast %cst : f32 to vector<8x128xf32>
    %24 = arith.maximumf %22, %23 : vector<8x128xf32>
    %c0_7 = arith.constant 0 : index
    %c0_8 = arith.constant 0 : index
    %25 = vector.load %arg5[%c0_7, %c0_8] : memref<128x128xf32, #tpu.memory_space<vmem>>, vector<128x128xf32>
    %cst_9 = arith.constant dense<0.000000e+00> : vector<8x128xf32>
    %26 = tpu.matmul %24, %25, %cst_9 {dimension_numbers = #tpu.dot_dimension_numbers<[1], [0], [0], [1], [0, 0, 1, 1], [], []>} : vector<8x128xf32>, vector<128x128xf32>, vector<8x128xf32> -> vector<8x128xf32>
    %c0_10 = arith.constant 0 : index
    %c0_11 = arith.constant 0 : index
    %27 = vector.load %arg6[%c0_10, %c0_11] : memref<1x128xf32, #tpu.memory_space<vmem>>, vector<1x128xf32>
    %28 = vector.broadcast %27 : vector<1x128xf32> to vector<8x128xf32>
    %29 = arith.addf %26, %28 : vector<8x128xf32>
    %cst_12 = arith.constant 0.000000e+00 : f32
    %30 = vector.broadcast %cst_12 : f32 to vector<8x128xf32>
    %31 = arith.maximumf %29, %30 : vector<8x128xf32>
    %c0_13 = arith.constant 0 : index
    %c0_14 = arith.constant 0 : index
    %32 = vector.load %arg7[%c0_13, %c0_14] : memref<128x1xf32, #tpu.memory_space<vmem>>, vector<128x1xf32>
    %cst_15 = arith.constant dense<0.000000e+00> : vector<8x1xf32>
    %33 = tpu.matmul %31, %32, %cst_15 {dimension_numbers = #tpu.dot_dimension_numbers<[1], [0], [0], [1], [0, 0, 1, 1], [], []>} : vector<8x128xf32>, vector<128x1xf32>, vector<8x1xf32> -> vector<8x1xf32>
    %c0_16 = arith.constant 0 : index
    %c0_17 = arith.constant 0 : index
    %34 = vector.load %arg8[%c0_16, %c0_17] : memref<1x1xf32, #tpu.memory_space<vmem>>, vector<1x1xf32>
    %35 = vector.broadcast %34 : vector<1x1xf32> to vector<8x1xf32>
    %36 = arith.addf %33, %35 : vector<8x1xf32>
    %c0_18 = arith.constant 0 : index
    %c0_19 = arith.constant 0 : index
    %37 = vector.load %arg9[%c0_18, %c0_19] : memref<8x1xf32, #tpu.memory_space<vmem>>, vector<8x1xf32>
    tpu.vector_store %arg9[%c0_18, %c0_19], %36 {strides = array<i32>} : memref<8x1xf32, #tpu.memory_space<vmem>>, vector<8x1xf32>,
    return
  }
  func.func @transform_0(%arg0: i32) -> (i32, i32) {
    %c0_i32 = arith.constant 0 : i32
    %c0_i32_0 = arith.constant 0 : i32
    return %arg0, %c0_i32 : i32, i32
  }
  func.func @transform_1(%arg0: i32) -> (i32, i32) {
    %c0_i32 = arith.constant 0 : i32
    %c0_i32_0 = arith.constant 0 : i32
    return %arg0, %c0_i32 : i32, i32
  }
  func.func @transform_2(%arg0: i32) -> (i32, i32) {
    %c0_i32 = arith.constant 0 : i32
    %c0_i32_0 = arith.constant 0 : i32
    %c0_i32_1 = arith.constant 0 : i32
    return %c0_i32, %c0_i32_0 : i32, i32
  }
  func.func @transform_3(%arg0: i32) -> (i32, i32) {
    %c0_i32 = arith.constant 0 : i32
    %c0_i32_0 = arith.constant 0 : i32
    %c0_i32_1 = arith.constant 0 : i32
    return %c0_i32, %c0_i32_0 : i32, i32
  }
  func.func @transform_4(%arg0: i32) -> (i32, i32) {
    %c0_i32 = arith.constant 0 : i32
    %c0_i32_0 = arith.constant 0 : i32
    %c0_i32_1 = arith.constant 0 : i32
    return %c0_i32, %c0_i32_0 : i32, i32
  }
  func.func @transform_5(%arg0: i32) -> (i32, i32) {
    %c0_i32 = arith.constant 0 : i32
    %c0_i32_0 = arith.constant 0 : i32
    %c0_i32_1 = arith.constant 0 : i32
    return %c0_i32, %c0_i32_0 : i32, i32
  }
  func.func @transform_6(%arg0: i32) -> (i32, i32) {
    %c0_i32 = arith.constant 0 : i32
    %c0_i32_0 = arith.constant 0 : i32
    %c0_i32_1 = arith.constant 0 : i32
    return %c0_i32, %c0_i32_0 : i32, i32
  }
  func.func @transform_7(%arg0: i32) -> (i32, i32) {
    %c0_i32 = arith.constant 0 : i32
    %c0_i32_0 = arith.constant 0 : i32
    %c0_i32_1 = arith.constant 0 : i32
    return %c0_i32, %c0_i32_0 : i32, i32
  }
  func.func @transform_8(%arg0: i32) -> (i32, i32) {
    %c0_i32 = arith.constant 0 : i32
    %c0_i32_0 = arith.constant 0 : i32
    return %arg0, %c0_i32 : i32, i32
  }
}

</mosaic_0001>

<bundles_post_ra>
// kernel: _lambda_.1
= control target key start
LH: loop header
LB: loop body
LE: loop exit
PB: predicated region body
PF: predicated region fallthrough
CT: control target
= control target key end

     0   :  { %s628_s0 = inlined_call_operand.vmem [shape: f32[8,2], index: 0, kind: input, shape index: {}]   ;;  %s629_s1 = inlined_call_operand.vmem [shape: f32[8,1], index: 1, kind: input, shape index: {}]   ;;  %s630_s2 = inlined_call_operand.vmem [shape: f32[3,128], index: 2, kind: input, shape index: {}]   ;;  %s631_s3 = inlined_call_operand.vmem [shape: f32[1,128], index: 3, kind: input, shape index: {}]   ;;  %s632_s4 = inlined_call_operand.hbm [shape: f32[128,128], index: 4, kind: input, shape index: {}]   ;;  %s633_s5 = inlined_call_operand.vmem [shape: f32[1,128], index: 5, kind: input, shape index: {}]   ;;  %s634_s6 = inlined_call_operand.hbm [shape: f32[128,1], index: 6, kind: input, shape index: {}]   ;;  %s635_s7 = inlined_call_operand.<no memory space> [shape: f32[1,1], index: 7, kind: input, shape index: {}]   ;;  %s636_s8 = inlined_call_operand.vmem [shape: f32[8,1], index: 8, kind: output, shape index: {}]  }
   0x1   :  { %v13_v0 = vstv %s635_s7 }
   0x2   :  { %14 = vst [vmem:[#allocation2] sm:$0x1] %v13_v0 }
   0x3   :  { %15 = vsyncpa [#allocation4], 0 }
   0x4   :  { %16 = vsyncpa [#allocation6], 0  ;;  %s513_s29 = smov [#allocation3]   ;;  %s465_s11 = scalar_lea.hbm %s632_s4, 2048 }
   0x5   :  { %s30_s30 = sshll.u32 %s513_s29, 4  ;;  %p466_p0 = scmp.ne.s32.totalorder %s632_s4, %s465_s11  ;;  %s31_s30 = int_to_ptr.vmem [resolvable:$true] %s30_s30 }
   0x6   :  { %p469_p1 = scmp.lt.u32.totalorder %s465_s11, %s632_s4 }
   0x8   :  { %p471_p2 = pnand %p469_p1, %p466_p0 }
   0xa   :  { %474 = shalt.err (!%p471_p2)
}
   0xb   :  { %s475_s7 = scalar_lea.vmem %s31_s30, 2048  ;;  %p480_p4 = scmp.lt.s32.totalorder %s31_s30, %s31_s30 }
   0xc   :  { %p476_p3 = scmp.ne.s32.totalorder %s31_s30, %s475_s7  ;;  %p481_p5 = scmp.lt.s32.totalorder %s475_s7, %s475_s7 }
   0xe   :  { %p482_p6 = por %p481_p5, %p480_p4 }
  0x10   :  { %p483_p7 = pnand %p482_p6, %p476_p3 }
  0x12   :  { %486 = shalt.err (!%p483_p7)
}
  0x13   :  { %s514_s16 = smov 128   ;;  %s515_s17 = smov 8  }
  0x14   :  { %36 = dma.hbm_to_vmem [thread:$0]  %s632_s4, 2048, %s31_s30, [#allocation4], %s514_s16, %s514_s16, %s515_s17  }
  0x15   :  { %s516_s20 = smov [#allocation5]   ;;  %s487_s24 = scalar_lea.hbm %s634_s6, 2048 }
  0x16   :  { %s44_s21 = sshll.u32 %s516_s20, 4  ;;  %p488_p8 = scmp.ne.s32.totalorder %s634_s6, %s487_s24  ;;  %s45_s21 = int_to_ptr.vmem [resolvable:$true] %s44_s21 }
  0x17   :  { %p491_p9 = scmp.lt.u32.totalorder %s487_s24, %s634_s6 }
  0x19   :  { %p493_p10 = pnand %p491_p9, %p488_p8 }
  0x1b   :  { %496 = shalt.err (!%p493_p10)
}
  0x1c   :  { %s497_s29 = scalar_lea.vmem %s45_s21, 2048  ;;  %p502_p12 = scmp.lt.s32.totalorder %s45_s21, %s45_s21 }
  0x1d   :  { %p498_p11 = scmp.ne.s32.totalorder %s45_s21, %s497_s29  ;;  %p503_p13 = scmp.lt.s32.totalorder %s497_s29, %s497_s29 }
  0x1f   :  { %p504_p0 = por %p503_p13, %p502_p12 }
  0x21   :  { %p505_p1 = pnand %p504_p0, %p498_p11 }
  0x23   :  { %508 = shalt.err (!%p505_p1)
}
  0x24   :  { %50 = dma.hbm_to_vmem [thread:$0]  %s634_s6, 2048, %s45_s21, [#allocation6], %s514_s16, %s514_s16, %s515_s17  }
  0x25   :  { %509 = dma.done.wait [#allocation4], 2048  }
  0x26   :  { %510 = vsyncadd [#allocation4], 4294965248 }
  0x27   :  { %511 = dma.done.wait [#allocation6], 2048  }
  0x28   :  { %512 = vsyncadd [#allocation6], 4294965248  ;;  %v517_v1 = vmov 0   ;;  %v518_v2 = vmov 0.0|0.0   ;;  %v59_v3 = vld [vmem:[%s628_s0] sm:$0xff]  ;;  %v103_v6 = vld [vmem:[#allocation3 + $0x8] sm:$0xff]  ;;  %v74_v52 = vlaneseq }
  0x29   :  { %461 = vset.pattern.permute.xlu0 %v517_v1  ;;  %463 = vset.pattern.permute.xlu1 %v517_v1  ;;  %v60_v4 = vld [vmem:[%s629_s1] sm:$0xff]  ;;  %v104_v7 = vld [vmem:[#allocation3 + $0x10] sm:$0xff]  ;;  %v519_v11 = vmov 1   ;;  %v107_v13 = vld [vmem:[#allocation3 + $0x28] sm:$0xff]  ;;  %vm520_vm0 = vmmov 0   ;;  %v521_v20 = vmov 0.0  }
  0x2a   :  { %404 = vmatprep.subr.bf16.mxu0 %v518_v2  ;;  %428 = vmatprep.subr.bf16.mxu1 %v518_v2  ;;  %v102_v5 = vld [vmem:[#allocation3] sm:$0xff]  ;;  %v105_v8 = vld [vmem:[#allocation3 + $0x18] sm:$0xff]  ;;  %v108_v15 = vld [vmem:[#allocation3 + $0x30] sm:$0xff]  ;;  %v75_v53 = vshrl.u32 %v74_v52, 7  ;;  %vm289_vm1 = vcmask 7168  }
  0x2b   :  { %71 = vperm.xlu0 %461, %v59_v3   ;;  %92 = vperm.xlu1 %463, %v60_v4   ;;  %v405_v9 = vpack.c.bf16 %v103_v6, %v102_v5  ;;  %v408_v10 = vpack.c.bf16 %v105_v8, %v104_v7  ;;  %v106_v12 = vld [vmem:[#allocation3 + $0x20] sm:$0xff]  ;;  %v109_v16 = vld [vmem:[#allocation3 + $0x38] sm:$0xff]  ;;  %v111_v19 = vld [vmem:[#allocation3 + $0x48] sm:$0xff] }
  0x2c   :  { %v411_v14 = vpack.c.bf16 %v107_v13, %v106_v12  ;;  %v414_v17 = vpack.c.bf16 %v109_v16, %v108_v15  ;;  %v110_v18 = vld [vmem:[#allocation3 + $0x40] sm:$0xff]  ;;  %366 = vmatprep.mubr.msk.f32.mxu0 %vm520_vm0, %v521_v20  ;;  %v197_v22 = vld [vmem:[#allocation5 + $0x8] sm:$0xff]  ;;  %v198_v23 = vld [vmem:[#allocation5 + $0x10] sm:$0xff]  ;;  %401 = vmatprep.mubr.msk.f32.mxu1 %vm520_vm0, %v521_v20  ;;  %v76_v54 = vsub.s32 0, %v75_v53  ;;  %v86_v57 = vsub.s32 1, %v75_v53 }
  0x2d   :  { %406 = vmatpush3.bf16.msra.mxu0 %v405_v9  ;;  %v196_v21 = vld [vmem:[#allocation5] sm:$0xff]  ;;  %v199_v25 = vld [vmem:[#allocation5 + $0x18] sm:$0xff]  ;;  %v417_v26 = vpack.c.bf16 %v111_v19, %v110_v18  ;;  %v112_v27 = vld [vmem:[#allocation3 + $0x50] sm:$0xff]  ;;  %v97_v58 = vsub.s32 2, %v75_v53 }
  0x2e   :  { %407 = vmatprep.subr.bf16.mxu0 %v518_v2  ;;  %v429_v24 = vpack.c.bf16 %v197_v22, %v196_v21  ;;  %v113_v28 = vld [vmem:[#allocation3 + $0x58] sm:$0xff]  ;;  %v432_v29 = vpack.c.bf16 %v199_v25, %v198_v23  ;;  %v200_v30 = vld [vmem:[#allocation5 + $0x20] sm:$0xff]  ;;  %v201_v31 = vld [vmem:[#allocation5 + $0x28] sm:$0xff] }
  0x2f   :  { %462 = vset.pattern.permute.xlu0 %v519_v11  ;;  %v420_v32 = vpack.c.bf16 %v113_v28, %v112_v27  ;;  %v114_v33 = vld [vmem:[#allocation3 + $0x60] sm:$0xff]  ;;  %v115_v34 = vld [vmem:[#allocation3 + $0x68] sm:$0xff]  ;;  %v435_v35 = vpack.c.bf16 %v201_v31, %v200_v30  ;;  %v202_v36 = vld [vmem:[#allocation5 + $0x30] sm:$0xff] }
  0x30   :  { %81 = vperm.xlu0 %462, %v59_v3   ;;  %430 = vmatpush3.bf16.msra.mxu1 %v429_v24  ;;  %v203_v37 = vld [vmem:[#allocation5 + $0x38] sm:$0xff]  ;;  %v423_v38 = vpack.c.bf16 %v115_v34, %v114_v33  ;;  %v116_v39 = vld [vmem:[#allocation3 + $0x70] sm:$0xff]  ;;  %v204_v42 = vld [vmem:[#allocation5 + $0x40] sm:$0xff] }
  0x31   :  { %409 = vmatpush3.bf16.msra.mxu0 %v408_v10  ;;  %431 = vmatprep.subr.bf16.mxu1 %v518_v2  ;;  %v117_v40 = vld [vmem:[#allocation3 + $0x78] sm:$0xff]  ;;  %v438_v41 = vpack.c.bf16 %v203_v37, %v202_v36  ;;  %v205_v43 = vld [vmem:[#allocation5 + $0x48] sm:$0xff]  ;;  %v206_v46 = vld [vmem:[#allocation5 + $0x50] sm:$0xff] }
  0x32   :  { %410 = vmatprep.subr.bf16.mxu0 %v518_v2  ;;  %v426_v44 = vpack.c.bf16 %v117_v40, %v116_v39  ;;  %v441_v45 = vpack.c.bf16 %v205_v43, %v204_v42  ;;  %v207_v47 = vld [vmem:[#allocation5 + $0x58] sm:$0xff]  ;;  %v208_v49 = vld [vmem:[#allocation5 + $0x60] sm:$0xff]  ;;  %v209_v50 = vld [vmem:[#allocation5 + $0x68] sm:$0xff] }
  0x33   :  { %v444_v48 = vpack.c.bf16 %v207_v47, %v206_v46  ;;  %v447_v51 = vpack.c.bf16 %v209_v50, %v208_v49  ;;  %v61_v55 = vld [vmem:[%s630_s2] sm:$0x7]  ;;  %v210_v8 = vld [vmem:[#allocation5 + $0x70] sm:$0xff] }
  0x34   :  { %464 = vset.pattern.permute.xlu0 %v517_v1  ;;  %433 = vmatpush3.bf16.msra.mxu1 %v432_v29  ;;  %v77_v56 = vrot.slane %v61_v55, %v76_v54  ;;  %v87_v61 = vrot.slane %v61_v55, %v86_v57  ;;  %v98_v62 = vrot.slane %v61_v55, %v97_v58  ;;  %v297_v63 = vld [vmem:[%s631_s3] ss:$0 sm:$0xff] }
  0x35   :  { %412 = vmatpush3.bf16.msra.mxu0 %v411_v14  ;;  %434 = vmatprep.subr.bf16.mxu1 %v518_v2  ;;  %v211_v9 = vld [vmem:[#allocation5 + $0x78] sm:$0xff] }
  0x36   :  { %413 = vmatprep.subr.bf16.mxu0 %v518_v2  ;;  %v450_v10 = vpack.c.bf16 %v211_v9, %v210_v8  ;;  %v298_v11 = vld [vmem:[%s633_s5] ss:$0 sm:$0xff] }
  0x37   :  { %v299_v16 = vld [vmem:[#allocation2] ss:$0 sm:$0xff] }
  0x38   :  { %436 = vmatpush3.bf16.msra.mxu1 %v435_v35 }
  0x39   :  { %415 = vmatpush3.bf16.msra.mxu0 %v414_v17  ;;  %437 = vmatprep.subr.bf16.mxu1 %v518_v2 }
  0x3a   :  { %416 = vmatprep.subr.bf16.mxu0 %v518_v2 }
  0x3c   :  { %439 = vmatpush3.bf16.msra.mxu1 %v438_v41 }
  0x3d   :  { %418 = vmatpush3.bf16.msra.mxu0 %v417_v26  ;;  %440 = vmatprep.subr.bf16.mxu1 %v518_v2 }
  0x3e   :  { %419 = vmatprep.subr.bf16.mxu0 %v518_v2 }
  0x40   :  { %442 = vmatpush3.bf16.msra.mxu1 %v441_v45 }
  0x41   :  { %421 = vmatpush3.bf16.msra.mxu0 %v420_v32  ;;  %443 = vmatprep.subr.bf16.mxu1 %v518_v2 }
  0x42   :  { %422 = vmatprep.subr.bf16.mxu0 %v518_v2 }
  0x44   :  { %445 = vmatpush3.bf16.msra.mxu1 %v444_v48 }
  0x45   :  { %424 = vmatpush3.bf16.msra.mxu0 %v423_v38  ;;  %446 = vmatprep.subr.bf16.mxu1 %v518_v2 }
  0x46   :  { %425 = vmatprep.subr.bf16.mxu0 %v518_v2 }
  0x48   :  { %448 = vmatpush3.bf16.msra.mxu1 %v447_v51 }
  0x49   :  { %427 = vmatpush3.bf16.msra.mxu0 %v426_v44  ;;  %449 = vmatprep.subr.bf16.mxu1 %v518_v2 }
  0x4c   :  { %451 = vmatpush3.bf16.msra.mxu1 %v450_v10 }
  0xaa   :  { %v72_v59 = vpop.permute.xlu0 %71  ;;  %v93_v0 = vpop.permute.xlu1 %92 }
  0xab   :  { %v78_v60 = vmul.f32 %v77_v56, %v72_v59  ;;  %v99_v4 = vmul.f32 %v98_v62, %v93_v0 }
  0xad   :  { %v79_v2 = vadd.f32 %v297_v63, %v78_v60 }
  0xaf   :  { %v82_v1 = vpop.permute.xlu0 %81 }
  0xb0   :  { %v88_v3 = vmul.f32 %v87_v61, %v82_v1 }
  0xb2   :  { %v89_v5 = vadd.f32 %v88_v3, %v79_v2 }
  0xb4   :  { %v100_v6 = vadd.f32 %v99_v4, %v89_v5 }
  0xb6   :  { %v101_v7 = vmax.f32 %v100_v6, 0.0 }
  0xb8   :  { %367 = vmatmul.mubr.f32.vlgmr.msra.gmra.mrb[0].mxu0 %v101_v7 }
 0x18b   :  { %v191_v12 = vpop.f32.mrb[0].mxu0 }
 0x18c   :  { %v192_v13 = vadd.f32 %v298_v11, %v191_v12  ;;  %v368_v14 = vpop.f32.mrb[1].mxu0 }
 0x18e   :  { %v195_v15 = vmax.f32 %v192_v13, 0.0 }
 0x190   :  { %402 = vmatmul.mubr.f32.vlgmr.msra.gmra.mrb[0].mxu1 %v195_v15 }
 0x263   :  { %v285_v17 = vpop.f32.mrb[0].mxu1 }
 0x264   :  { %v286_v18 = vadd.f32 %v299_v16, %v285_v17  ;;  %v403_v19 = vpop.f32.mrb[1].mxu1 }
 0x266   :  { %290 = vst.msk [vmem:[%s636_s8] sm:$0xff] %vm289_vm1, %v286_v18 }
 0x267   :  { %295 = vsyncpa [#allocation4], 1 }
 0x268   :  { %296 = vsyncpa [#allocation6], 1 }

</bundles_post_ra>
